<compile_context>
chip_gen: v7x
topology: tpu7x:2x2x1
jax: 0.10.0
libtpu: 0.0.40
codegen_flags: <defaults>
</compile_context>

<pallas_src>
import jax
import jax.numpy as jnp
from jax.experimental import pallas as pl
from jax.experimental.pallas import tpu as pltpu

# ---- synthetic hyperparameters (module's __init__ implies these shapes) ----
INPUT_DIM = 32     # data1[:, :-1].shape[1]
NODES_L1  = 64
NODES_L2  = 32
NODES_L3  = 16
N_CLASSES = 5

# Lane-dense padded class axis (128 = TPU lane width) for the final matmul/store.
N_CLASSES_PAD = 128
NEG_BIG = jnp.float32(-1e30)   # padded-logit bias: exp(NEG_BIG - max) == 0 exactly in f32

BATCH = 16                     # small batch -> latency-bound; single grid step.


def sae_kernel(x_ref,
               w1_ref, b1_ref,
               w2_ref, b2_ref,
               w3_ref, b3_ref,
               w4_ref, b4_ref,
               o_ref):
    """Fused MLP forward: 3x (matmul + bias + ReLU), final matmul + bias + softmax.

    The final layer is padded to 128 output lanes; padded lanes carry bias = -1e30,
    so they vanish under softmax and the output store is a full-lane (unmasked) vst.
    """
    x = x_ref[...]

    h = jnp.dot(x, w1_ref[...], preferred_element_type=jnp.float32) + b1_ref[...]
    h = jnp.maximum(h, 0.0)

    h = jnp.dot(h, w2_ref[...], preferred_element_type=jnp.float32) + b2_ref[...]
    h = jnp.maximum(h, 0.0)

    h = jnp.dot(h, w3_ref[...], preferred_element_type=jnp.float32) + b3_ref[...]
    h = jnp.maximum(h, 0.0)

    z = jnp.dot(h, w4_ref[...], preferred_element_type=jnp.float32) + b4_ref[...]

    # Numerically stable softmax over the padded class axis. Padded lanes have
    # z ~ -1e30 -> exp(z - max) == 0, so the denominator equals the 5-class sum.
    z = z - jnp.max(z, axis=-1, keepdims=True)
    e = jnp.exp(z)
    s = jnp.sum(e, axis=-1, keepdims=True)
    inv = pl.reciprocal(s, approx=True)        # EUP vrcp (free slot)
    inv = inv * (2.0 - s * inv)                # one Newton step -> ~full f32 precision
    o_ref[...] = (e * inv).astype(o_ref.dtype)


def sae_forward(x, params):
    """x: (B, INPUT_DIM) float32. params: prepared dict (w4/b4 already lane-padded).

    Single kernel invocation, no grid: everything (inputs, ~19 KB of weights,
    padded output) is resident in VMEM — latency-bound, so fewer steps wins.
    """
    B = x.shape[0]
    w1, b1, w2, b2, w3, b3 = (params["w1"], params["b1"], params["w2"],
                              params["b2"], params["w3"], params["b3"])
    w4p, b4p = params["w4_pad"], params["b4_pad"]   # (NODES_L3, 128), (1, 128)

    n_param_elems = sum(int(a.size) for a in (w1, b1, w2, b2, w3, b3, w4p, b4p))
    cost = pl.CostEstimate(
        flops=2 * B * (INPUT_DIM * NODES_L1 + NODES_L1 * NODES_L2
                       + NODES_L2 * NODES_L3 + NODES_L3 * N_CLASSES_PAD),
        transcendentals=B * (N_CLASSES_PAD + 1),          # exp per lane + recip per row
        bytes_accessed=4 * (B * INPUT_DIM + n_param_elems + B * N_CLASSES_PAD),
    )

    out_padded = pl.pallas_call(
        sae_kernel,
        out_shape=jax.ShapeDtypeStruct((B, N_CLASSES_PAD), jnp.float32),
        cost_estimate=cost,
    )(x, w1, b1, w2, b2, w3, b3, w4p, b4p)

    # Drop the padded lanes; probabilities over the 5 real classes are unchanged.
    return out_padded[:, :N_CLASSES]


def init_params(key):
    """Deterministic synthetic parameters. PyTorch stores Linear weight as (out,in);
    we build (in,out) directly since the kernel computes x @ W + b. The final layer
    is additionally padded to 128 output lanes (zero weights, -1e30 bias) so the
    kernel's output store is lane-dense."""
    ks = jax.random.split(key, 8)

    def lin(kw, kb, fan_in, fan_out):
        bound = 1.0 / jnp.sqrt(fan_in)
        w = jax.random.uniform(kw, (fan_in, fan_out), jnp.float32, -bound, bound)
        b = jax.random.uniform(kb, (1, fan_out), jnp.float32, -bound, bound)
        return w, b

    w1, b1 = lin(ks[0], ks[1], INPUT_DIM, NODES_L1)
    w2, b2 = lin(ks[2], ks[3], NODES_L1, NODES_L2)
    w3, b3 = lin(ks[4], ks[5], NODES_L2, NODES_L3)
    w4, b4 = lin(ks[6], ks[7], NODES_L3, N_CLASSES)

    # Pad final layer to the full 128-lane width (done once at init, not per call).
    w4_pad = jnp.zeros((NODES_L3, N_CLASSES_PAD), jnp.float32).at[:, :N_CLASSES].set(w4)
    b4_pad = jnp.full((1, N_CLASSES_PAD), NEG_BIG, jnp.float32).at[:, :N_CLASSES].set(b4)

    return dict(w1=w1, b1=b1, w2=w2, b2=b2, w3=w3, b3=b3,
                w4=w4, b4=b4, w4_pad=w4_pad, b4_pad=b4_pad)


def sae_reference(x, p):
    """Pure-JAX reference using the UNPADDED final layer."""
    h = jnp.maximum(x @ p["w1"] + p["b1"], 0.0)
    h = jnp.maximum(h @ p["w2"] + p["b2"], 0.0)
    h = jnp.maximum(h @ p["w3"] + p["b3"], 0.0)
    z = h @ p["w4"] + p["b4"]
    return jax.nn.softmax(z, axis=1)


if __name__ == "__main__":
    key = jax.random.PRNGKey(0)
    k_x, k_p = jax.random.split(key)

    x = jax.random.normal(k_x, (BATCH, INPUT_DIM), jnp.float32)
    params = init_params(k_p)

    out = sae_forward(x, params)
    out = jax.block_until_ready(out)

    ref = sae_reference(x, params)
    assert out.shape == (BATCH, N_CLASSES)
    assert jnp.allclose(out, ref, atol=1e-5, rtol=1e-5), "mismatch vs pure-JAX reference"
    # softmax rows must sum to 1
    assert jnp.allclose(jnp.sum(out, axis=1), jnp.ones((BATCH,)), atol=1e-5)

    print("KERNEL_OK")
</pallas_src>

<mosaic_0001>
module attributes {stable_mosaic.version = 11 : i64} {
  func.func @sae_kernel(%arg0: memref<16x32xf32, #tpu.memory_space<vmem>>, %arg1: memref<32x64xf32, #tpu.memory_space<vmem>>, %arg2: memref<1x64xf32, #tpu.memory_space<vmem>>, %arg3: memref<64x32xf32, #tpu.memory_space<vmem>>, %arg4: memref<1x32xf32, #tpu.memory_space<vmem>>, %arg5: memref<32x16xf32, #tpu.memory_space<vmem>>, %arg6: memref<1x16xf32, #tpu.memory_space<vmem>>, %arg7: memref<16x128xf32, #tpu.memory_space<vmem>>, %arg8: memref<1x128xf32, #tpu.memory_space<vmem>>, %arg9: memref<16x128xf32, #tpu.memory_space<vmem>>) attributes {dimension_semantics = [], scalar_prefetch = 0 : i64, scratch_operands = 0 : i64, tpu.core_type = #tpu.core_type<tc>} {
    %c0 = arith.constant 0 : index
    %c0_0 = arith.constant 0 : index
    %0 = vector.load %arg0[%c0, %c0_0] : memref<16x32xf32, #tpu.memory_space<vmem>>, vector<16x32xf32>
    %c0_1 = arith.constant 0 : index
    %c0_2 = arith.constant 0 : index
    %1 = vector.load %arg1[%c0_1, %c0_2] : memref<32x64xf32, #tpu.memory_space<vmem>>, vector<32x64xf32>
    %cst = arith.constant dense<0.000000e+00> : vector<16x64xf32>
    %2 = tpu.matmul %0, %1, %cst {dimension_numbers = #tpu.dot_dimension_numbers<[1], [0], [0], [1], [0, 0, 1, 1], [], []>} : vector<16x32xf32>, vector<32x64xf32>, vector<16x64xf32> -> vector<16x64xf32>
    %c0_3 = arith.constant 0 : index
    %c0_4 = arith.constant 0 : index
    %3 = vector.load %arg2[%c0_3, %c0_4] : memref<1x64xf32, #tpu.memory_space<vmem>>, vector<1x64xf32>
    %4 = vector.broadcast %3 : vector<1x64xf32> to vector<16x64xf32>
    %5 = arith.addf %2, %4 : vector<16x64xf32>
    %cst_5 = arith.constant 0.000000e+00 : f32
    %6 = vector.broadcast %cst_5 : f32 to vector<16x64xf32>
    %7 = arith.maximumf %5, %6 : vector<16x64xf32>
    %c0_6 = arith.constant 0 : index
    %c0_7 = arith.constant 0 : index
    %8 = vector.load %arg3[%c0_6, %c0_7] : memref<64x32xf32, #tpu.memory_space<vmem>>, vector<64x32xf32>
    %cst_8 = arith.constant dense<0.000000e+00> : vector<16x32xf32>
    %9 = tpu.matmul %7, %8, %cst_8 {dimension_numbers = #tpu.dot_dimension_numbers<[1], [0], [0], [1], [0, 0, 1, 1], [], []>} : vector<16x64xf32>, vector<64x32xf32>, vector<16x32xf32> -> vector<16x32xf32>
    %c0_9 = arith.constant 0 : index
    %c0_10 = arith.constant 0 : index
    %10 = vector.load %arg4[%c0_9, %c0_10] : memref<1x32xf32, #tpu.memory_space<vmem>>, vector<1x32xf32>
    %11 = vector.broadcast %10 : vector<1x32xf32> to vector<16x32xf32>
    %12 = arith.addf %9, %11 : vector<16x32xf32>
    %cst_11 = arith.constant 0.000000e+00 : f32
    %13 = vector.broadcast %cst_11 : f32 to vector<16x32xf32>
    %14 = arith.maximumf %12, %13 : vector<16x32xf32>
    %c0_12 = arith.constant 0 : index
    %c0_13 = arith.constant 0 : index
    %15 = vector.load %arg5[%c0_12, %c0_13] : memref<32x16xf32, #tpu.memory_space<vmem>>, vector<32x16xf32>
    %cst_14 = arith.constant dense<0.000000e+00> : vector<16x16xf32>
    %16 = tpu.matmul %14, %15, %cst_14 {dimension_numbers = #tpu.dot_dimension_numbers<[1], [0], [0], [1], [0, 0, 1, 1], [], []>} : vector<16x32xf32>, vector<32x16xf32>, vector<16x16xf32> -> vector<16x16xf32>
    %c0_15 = arith.constant 0 : index
    %c0_16 = arith.constant 0 : index
    %17 = vector.load %arg6[%c0_15, %c0_16] : memref<1x16xf32, #tpu.memory_space<vmem>>, vector<1x16xf32>
    %18 = vector.broadcast %17 : vector<1x16xf32> to vector<16x16xf32>
    %19 = arith.addf %16, %18 : vector<16x16xf32>
    %cst_17 = arith.constant 0.000000e+00 : f32
    %20 = vector.broadcast %cst_17 : f32 to vector<16x16xf32>
    %21 = arith.maximumf %19, %20 : vector<16x16xf32>
    %c0_18 = arith.constant 0 : index
    %c0_19 = arith.constant 0 : index
    %22 = vector.load %arg7[%c0_18, %c0_19] : memref<16x128xf32, #tpu.memory_space<vmem>>, vector<16x128xf32>
    %cst_20 = arith.constant dense<0.000000e+00> : vector<16x128xf32>
    %23 = tpu.matmul %21, %22, %cst_20 {dimension_numbers = #tpu.dot_dimension_numbers<[1], [0], [0], [1], [0, 0, 1, 1], [], []>} : vector<16x16xf32>, vector<16x128xf32>, vector<16x128xf32> -> vector<16x128xf32>
    %c0_21 = arith.constant 0 : index
    %c0_22 = arith.constant 0 : index
    %24 = vector.load %arg8[%c0_21, %c0_22] : memref<1x128xf32, #tpu.memory_space<vmem>>, vector<1x128xf32>
    %25 = vector.broadcast %24 : vector<1x128xf32> to vector<16x128xf32>
    %26 = arith.addf %23, %25 : vector<16x128xf32>
    %cst_23 = arith.constant dense<0xFF800000> : vector<16xf32>
    %27 = vector.multi_reduction <maximumf>, %26, %cst_23 [1] : vector<16x128xf32> to vector<16xf32>
    %28 = vector.shape_cast %27 : vector<16xf32> to vector<16x1xf32>
    %29 = vector.broadcast %28 : vector<16x1xf32> to vector<16x128xf32>
    %30 = arith.subf %26, %29 : vector<16x128xf32>
    %31 = math.exp %30 : vector<16x128xf32>
    %cst_24 = arith.constant dense<0.000000e+00> : vector<16xf32>
    %32 = vector.multi_reduction <add>, %31, %cst_24 [1] : vector<16x128xf32> to vector<16xf32>
    %33 = vector.shape_cast %32 : vector<16xf32> to vector<16x1xf32>
    %34 = tpu.reciprocal %33 {approx = true} : vector<16x1xf32> -> vector<16x1xf32>
    %35 = arith.mulf %33, %34 : vector<16x1xf32>
    %cst_25 = arith.constant 2.000000e+00 : f32
    %36 = vector.broadcast %cst_25 : f32 to vector<16x1xf32>
    %37 = arith.subf %36, %35 : vector<16x1xf32>
    %38 = arith.mulf %34, %37 : vector<16x1xf32>
    %39 = vector.broadcast %38 : vector<16x1xf32> to vector<16x128xf32>
    %40 = arith.mulf %31, %39 : vector<16x128xf32>
    %c0_26 = arith.constant 0 : index
    %c0_27 = arith.constant 0 : index
    %41 = vector.load %arg9[%c0_26, %c0_27] : memref<16x128xf32, #tpu.memory_space<vmem>>, vector<16x128xf32>
    tpu.vector_store %arg9[%c0_26, %c0_27], %40 {strides = array<i32>} : memref<16x128xf32, #tpu.memory_space<vmem>>, vector<16x128xf32>,
    return
  }
}

</mosaic_0001>

<bundles_post_ra>
// kernel: tpu_custom_call.1
= control target key start
LH: loop header
LB: loop body
LE: loop exit
PB: predicated region body
PF: predicated region fallthrough
CT: control target
= control target key end

     0   :  { %vm46_vm0 = vcmask 261120   ;;  %s754_s0 = inlined_call_operand.vmem [shape: f32[16,32], index: 0, kind: input, shape index: {}]   ;;  %s755_s1 = inlined_call_operand.vmem [shape: f32[32,64], index: 1, kind: input, shape index: {}]   ;;  %s756_s2 = inlined_call_operand.vmem [shape: f32[1,64], index: 2, kind: input, shape index: {}]   ;;  %s757_s3 = inlined_call_operand.vmem [shape: f32[64,32], index: 3, kind: input, shape index: {}]   ;;  %s758_s4 = inlined_call_operand.vmem [shape: f32[1,32], index: 4, kind: input, shape index: {}]   ;;  %s759_s5 = inlined_call_operand.vmem [shape: f32[32,16], index: 5, kind: input, shape index: {}]   ;;  %s760_s6 = inlined_call_operand.vmem [shape: f32[1,16], index: 6, kind: input, shape index: {}]   ;;  %s761_s7 = inlined_call_operand.vmem [shape: f32[16,128], index: 7, kind: input, shape index: {}]   ;;  %s762_s8 = inlined_call_operand.vmem [shape: f32[1,128], index: 8, kind: input, shape index: {}]   ;;  %s763_s9 = inlined_call_operand.hbm [shape: f32[16,128], index: 9, kind: output, shape index: {}]  }
   0x1   :  { %v35_v0 = vld [vmem:[%s755_s1] sm:$0xff]  ;;  %v36_v1 = vld [vmem:[%s755_s1 + $0x8] sm:$0xff]  ;;  %v37_v2 = vld [vmem:[%s755_s1 + $0x10] sm:$0xff] }
   0x2   :  { %v542_v3 = vpack.c.bf16 %v36_v1, %v35_v0  ;;  %v38_v4 = vld [vmem:[%s755_s1 + $0x18] sm:$0xff]  ;;  %v33_v5 = vld [vmem:[%s754_s0] sm:$0xff]  ;;  %v131_v8 = vld [vmem:[%s757_s3 + $0x8] sm:$0xff] }
   0x3   :  { %v546_v6 = vpack.c.bf16 %v38_v4, %v37_v2  ;;  %502 = vmatprep.mubr.msk.f32.mxu0 %vm46_vm0, %v33_v5  ;;  %v130_v7 = vld [vmem:[%s757_s3] sm:$0xff]  ;;  %v132_v9 = vld [vmem:[%s757_s3 + $0x10] sm:$0xff]  ;;  %v133_v11 = vld [vmem:[%s757_s3 + $0x18] sm:$0xff] }
   0x4   :  { %543 = vmatprep.subr.bf16.mxu0 %v542_v3  ;;  %v550_v10 = vpack.c.bf16 %v131_v8, %v130_v7  ;;  %v554_v12 = vpack.c.bf16 %v133_v11, %v132_v9  ;;  %v134_v13 = vld [vmem:[%s757_s3 + $0x20] sm:$0xff]  ;;  %v135_v14 = vld [vmem:[%s757_s3 + $0x28] sm:$0xff] }
   0x5   :  { %545 = vmatpush3.bf16.msra.mxu0 %v542_v3 }
   0x6   :  { %14 = vsyncpa [#allocation3], 0  ;;  %547 = vmatprep.subr.bf16.mxu0 %v546_v6  ;;  %551 = vmatprep.subr.bf16.mxu1 %v550_v10  ;;  %v558_v15 = vpack.c.bf16 %v135_v14, %v134_v13  ;;  %v34_v16 = vld [vmem:[%s754_s0 + $0x8] sm:$0xff]  ;;  %v136_v17 = vld [vmem:[%s757_s3 + $0x30] sm:$0xff]  ;;  %vm145_vm1 = vcmask 523264   ;;  %vm332_vm2 = vcmask 130048  }
   0x7   :  { %553 = vmatpush3.bf16.msra.mxu1 %v550_v10  ;;  %v137_v18 = vld [vmem:[%s757_s3 + $0x38] sm:$0xff]  ;;  %v229_v20 = vld [vmem:[%s759_s5] sm:$0xff]  ;;  %v230_v21 = vld [vmem:[%s759_s5 + $0x8] sm:$0xff] }
   0x8   :  { %555 = vmatprep.subr.bf16.mxu1 %v554_v12  ;;  %v562_v19 = vpack.c.bf16 %v137_v18, %v136_v17  ;;  %v566_v22 = vpack.c.bf16 %v230_v21, %v229_v20  ;;  %v456_v23 = vld [vmem:[%s756_s2] ss:$0 sm:$0xff]  ;;  %v231_v30 = vld [vmem:[%s759_s5 + $0x10] sm:$0xff]  ;;  %v232_v31 = vld [vmem:[%s759_s5 + $0x18] sm:$0xff] }
   0x9   :  { %549 = vmatpush3.bf16.msra.mxu0 %v546_v6  ;;  %v570_v32 = vpack.c.bf16 %v232_v31, %v231_v30  ;;  %v459_v33 = vld [vmem:[%s758_s4] ss:$0 sm:$0xff]  ;;  %v324_v41 = vld [vmem:[%s761_s7 + $0x8] sm:$0xff] }
   0xa   :  { %567 = vmatprep.subr.bf16.mxu0 %v566_v22  ;;  %v323_v40 = vld [vmem:[%s761_s7] sm:$0xff] }
   0xb   :  { %557 = vmatpush3.bf16.msra.mxu1 %v554_v12  ;;  %v574_v42 = vpack.c.bf16 %v324_v41, %v323_v40  ;;  %v462_v43 = vld [vmem:[%s760_s6] ss:$0 sm:$0xff]  ;;  %s613_s6 = smov [#allocation2]  }
   0xc   :  { %503 = vmatmul.mubr.msk.f32.vlgmr.msra.gmra.mrb[0].mxu0 %vm46_vm0, %v34_v16  ;;  %559 = vmatprep.subr.bf16.mxu1 %v558_v15  ;;  %v465_v50 = vld [vmem:[%s762_s8] ss:$0 sm:$0xff]  ;;  %s445_s7 = sshll.u32 %s613_s6, 4  ;;  %s446_s7 = int_to_ptr.vmem [resolvable:$true] %s445_s7 }
   0xd   :  { %569 = vmatpush3.bf16.msra.mxu0 %v566_v22  ;;  %s589_s8 = scalar_lea.vmem %s446_s7, 256  ;;  %p594_p1 = scmp.lt.s32.totalorder %s446_s7, %s446_s7 }
   0xe   :  { %571 = vmatprep.subr.bf16.mxu0 %v570_v32  ;;  %p590_p0 = scmp.ne.s32.totalorder %s446_s7, %s589_s8  ;;  %p595_p2 = scmp.lt.s32.totalorder %s589_s8, %s589_s8 }
   0xf   :  { %561 = vmatpush3.bf16.msra.mxu1 %v558_v15 }
  0x10   :  { %563 = vmatprep.subr.bf16.mxu1 %v562_v19  ;;  %p596_p3 = por %p595_p2, %p594_p1 }
  0x11   :  { %573 = vmatpush3.bf16.msra.mxu0 %v570_v32 }
  0x12   :  { %575 = vmatprep.subr.bf16.mxu0 %v574_v42  ;;  %p597_p4 = pnand %p596_p3, %p590_p0 }
  0x13   :  { %565 = vmatpush3.bf16.msra.mxu1 %v562_v19 }
  0xdf   :  { %v504_v24 = vpop.f32.mrb[0].mxu0 }
  0xe0   :  { %v125_v25 = vadd.f32 %v504_v24, %v456_v23  ;;  %v119_v26 = vpop.f32.mrb[1].mxu0 }
  0xe1   :  { %v120_v27 = vadd.f32 %v456_v23, %v119_v26 }
  0xe2   :  { %v129_v29 = vmax.f32 %v125_v25, 0.0 }
  0xe3   :  { %v128_v28 = vmax.f32 %v120_v27, 0.0 }
  0xe5   :  { %521 = vmatprep.mubr.msk.f32.mxu1 %vm145_vm1, %v128_v28 }
  0xe6   :  { %522 = vmatmul.mubr.msk.f32.vlgmr.msra.gmra.mrb[0].mxu1 %vm145_vm1, %v129_v29 }
 0x1b9   :  { %v523_v34 = vpop.f32.mrb[0].mxu1 }
 0x1ba   :  { %v224_v35 = vadd.f32 %v523_v34, %v459_v33  ;;  %v218_v36 = vpop.f32.mrb[1].mxu1 }
 0x1bb   :  { %v219_v37 = vadd.f32 %v459_v33, %v218_v36 }
 0x1bc   :  { %v228_v39 = vmax.f32 %v224_v35, 0.0 }
 0x1bd   :  { %v227_v38 = vmax.f32 %v219_v37, 0.0 }
 0x1bf   :  { %532 = vmatprep.mubr.msk.f32.mxu0 %vm46_vm0, %v227_v38 }
 0x1c0   :  { %533 = vmatmul.mubr.msk.f32.vlgmr.msra.gmra.mrb[2].mxu0 %vm46_vm0, %v228_v39 }
 0x1c1   :  { %577 = vmatpush3.bf16.msra.mxu0 %v574_v42 }
 0x293   :  { %v534_v44 = vpop.f32.mrb[2].mxu0 }
 0x294   :  { %v318_v45 = vadd.f32 %v534_v44, %v462_v43  ;;  %v312_v46 = vpop.f32.mrb[3].mxu0 }
 0x295   :  { %v313_v47 = vadd.f32 %v462_v43, %v312_v46 }
 0x296   :  { %v322_v49 = vmax.f32 %v318_v45, 0.0 }
 0x297   :  { %v321_v48 = vmax.f32 %v313_v47, 0.0 }
 0x299   :  { %539 = vmatprep.mubr.msk.f32.mxu0 %vm332_vm2, %v321_v48 }
 0x29a   :  { %540 = vmatmul.mubr.msk.f32.vlgmr.msra.gmra.mrb[4].mxu0 %vm332_vm2, %v322_v49 }
 0x36d   :  { %v541_v51 = vpop.f32.mrb[4].mxu0 }
 0x36e   :  { %v405_v52 = vpop.f32.mrb[5].mxu0  ;;  %v411_v54 = vadd.f32 %v541_v51, %v465_v50 }
 0x36f   :  { %v406_v53 = vadd.f32 %v465_v50, %v405_v52 }
 0x371   :  { %414 = vmax.xlane.f32.xlu0 %v406_v53 }
 0x375   :  { %416 = vmax.xlane.f32.xlu0 %v411_v54 }
 0x3fe   :  { %v415_v55 = vpop.xlane.xlu0 %414 }
 0x3ff   :  { %v418_v56 = vsub.f32 %v406_v53, %v415_v55 }
 0x401   :  { %v420_v57 = vmul.f32 1.442695, %v418_v56 }
 0x402   :  { %v417_v58 = vpop.xlane.xlu0 %416 }
 0x403   :  { %581 = vpow2.f32 %v420_v57  ;;  %v419_v59 = vsub.f32 %v411_v54, %v417_v58 }
 0x405   :  { %v422_v60 = vmul.f32 1.442695, %v419_v59 }
 0x407   :  { %583 = vpow2.f32 %v422_v60 }
 0x40d   :  { %v582_v61 = vpop.eup %581 }
 0x40e   :  { %424 = vadd.xlane.f32.xlu1 %v582_v61 }
 0x411   :  { %v584_v62 = vpop.eup %583 }
 0x412   :  { %426 = vadd.xlane.f32.xlu1 %v584_v62 }
 0x49b   :  { %v425_v63 = vpop.xlane.xlu1 %424 }
 0x49c   :  { %585 = vrcp.f32 %v425_v63 }
 0x49f   :  { %v427_v0 = vpop.xlane.xlu1 %426 }
 0x4a0   :  { %587 = vrcp.f32 %v427_v0 }
 0x4a6   :  { %v586_v1 = vpop.eup %585 }
 0x4a7   :  { %v430_v2 = vmul.f32 %v586_v1, %v425_v63 }
 0x4a9   :  { %v432_v3 = vsub.f32 2.0, %v430_v2 }
 0x4aa   :  { %v588_v4 = vpop.eup %587 }
 0x4ab   :  { %v434_v5 = vmul.f32 %v586_v1, %v432_v3  ;;  %v431_v6 = vmul.f32 %v588_v4, %v427_v0 }
 0x4ad   :  { %v436_v7 = vmul.f32 %v582_v61, %v434_v5  ;;  %v433_v8 = vsub.f32 2.0, %v431_v6 }
 0x4af   :  { %438 = vst [vmem:[#allocation2] sm:$0xff] %v436_v7  ;;  %v435_v9 = vmul.f32 %v588_v4, %v433_v8 }
 0x4b1   :  { %v437_v10 = vmul.f32 %v584_v62, %v435_v9 }
 0x4b3   :  { %439 = vst [vmem:[#allocation2 + $0x8] sm:$0xff] %v437_v10 }
 0x4b4   :  { %600 = shalt.err (!%p597_p4)
}
 0x4b5   :  { %s601_s10 = scalar_lea.hbm %s763_s9, 256 }
 0x4b6   :  { %p602_p5 = scmp.ne.s32.totalorder %s763_s9, %s601_s10  ;;  %p605_p6 = scmp.lt.u32.totalorder %s601_s10, %s763_s9 }
 0x4b8   :  { %p607_p7 = pnand %p605_p6, %p602_p5 }
 0x4ba   :  { %610 = shalt.err (!%p607_p7)
}
 0x4bb   :  { %s614_s15 = smov 128   ;;  %s615_s16 = smov 8  }
 0x4bc   :  { %451 = dma.vmem_to_hbm [thread:$0]  %s446_s7, 256, %s763_s9, [#allocation3], %s614_s15, %s614_s15, %s615_s16  }
 0x4bd   :  { %611 = dma.done.wait [#allocation3], 256  }
 0x4be   :  { %612 = vsyncadd [#allocation3], 4294967040 }
 0x4bf   :  { %455 = vsyncpa [#allocation3], 1 }

</bundles_post_ra>
